<compile_context>
chip_gen: v7x
topology: tpu7x:2x2x1
jax: 0.10.0
libtpu: 0.0.40
codegen_flags: <defaults>
</compile_context>

<pallas_src>
import functools

import jax
import jax.numpy as jnp
from jax import lax
from jax.experimental import pallas as pl
from jax.experimental.pallas import tpu as pltpu

_ON_TPU = jax.default_backend() == "tpu"


def _uniform_affine(bits_u32, scale, offset):
    # bits -> f in [1, 2) via exponent bitcast, then sample = f*scale + offset.
    mant = (bits_u32 >> jnp.uint32(9)) | jnp.uint32(0x3F800000)
    f = lax.bitcast_convert_type(mant, jnp.float32)
    return f * scale + offset


def _tpu_sampler_kernel(seed_ref, scale_ref, offset_ref, out_ref):
    # seed_ref: SMEM (1,) int32
    # scale_ref/offset_ref: VMEM (rows_pad, 1) f32 (broadcast over lanes)
    # out_ref: VMEM (rows_pad, TILE) f32
    # Independent PRNG stream per tile -> correct under "parallel" sharding.
    pltpu.prng_seed(seed_ref[0], pl.program_id(0))
    bits = pltpu.prng_random_bits(out_ref.shape)
    if bits.dtype != jnp.uint32:
        bits = lax.bitcast_convert_type(bits, jnp.uint32)
    out_ref[...] = _uniform_affine(bits, scale_ref[...], offset_ref[...])


def _bits_sampler_kernel(bits_ref, scale_ref, offset_ref, out_ref):
    # Fallback path (non-TPU backends): random bits supplied from outside.
    out_ref[...] = _uniform_affine(bits_ref[...], scale_ref[...], offset_ref[...])


def _round_up(x, m):
    return ((x + m - 1) // m) * m


@functools.partial(jax.jit, static_argnames=("N", "names"))
def _sample_dict(N, names, low, high, seed):
    P = len(names)
    # Pack each parameter into k sublane rows so all 8 sublanes carry samples.
    k = max(1, 8 // P)
    rows = P * k
    rows_pad = _round_up(rows, 8)
    M = -(-N // k)  # samples carried per row

    # Lane tile: large multiple of 128, ~1 MiB per output buffer
    # (double-buffered by the pipeline => ~2 MiB live), safe on v5e/v6e/v7x.
    target_tile_bytes = 1 << 20
    lanes_cap = max(128, (target_tile_bytes // (rows_pad * 4)) // 128 * 128)
    tile = min(lanes_cap, _round_up(M, 128))
    M_pad = _round_up(M, tile)
    grid = (M_pad // tile,)

    # Per-row affine: sample = f * scale + offset with f ~ U[1, 2)
    #   => sample in [low, high).
    low_f = low.astype(jnp.float32)
    span = (high - low).astype(jnp.float32)
    row_scale = jnp.zeros((rows_pad,), jnp.float32).at[:rows].set(
        jnp.repeat(span, k))
    row_offset = jnp.zeros((rows_pad,), jnp.float32).at[:rows].set(
        jnp.repeat(low_f - span, k))
    scale_col = row_scale.reshape(rows_pad, 1)
    offset_col = row_offset.reshape(rows_pad, 1)

    out_shape = jax.ShapeDtypeStruct((rows_pad, M_pad), jnp.float32)
    col_spec = pl.BlockSpec((rows_pad, 1), lambda i: (0, 0))
    tile_spec = pl.BlockSpec((rows_pad, tile), lambda i: (0, i))

    if _ON_TPU:
        seed_arr = jnp.asarray([seed], dtype=jnp.int32)
        vmem_bytes = int(min(64 << 20, max(16 << 20, 6 * rows_pad * tile * 4)))
        slab = pl.pallas_call(
            _tpu_sampler_kernel,
            out_shape=out_shape,
            grid=grid,
            in_specs=[
                pl.BlockSpec(memory_space=pltpu.SMEM),
                col_spec,
                col_spec,
            ],
            out_specs=tile_spec,
            compiler_params=pltpu.CompilerParams(
                dimension_semantics=("parallel",),
                vmem_limit_bytes=vmem_bytes,
            ),
        )(seed_arr, scale_col, offset_col)
    else:
        # TODO(synk): TPU hardware PRNG has no lowering off-TPU; draw bits with
        # jax.random outside and keep only the uniform transform in Pallas.
        key = jax.random.key(seed)
        bits = jax.random.bits(key, (rows_pad, M_pad), dtype=jnp.uint32)
        bits_spec = pl.BlockSpec((rows_pad, tile), lambda i: (0, i))
        slab = pl.pallas_call(
            _bits_sampler_kernel,
            out_shape=out_shape,
            grid=grid,
            in_specs=[bits_spec, col_spec, col_spec],
            out_specs=tile_spec,
        )(bits, scale_col, offset_col)

    # Per-parameter (N,) vectors, built inside the jit (single dispatch).
    out = {}
    for p, name in enumerate(names):
        block = slab[p * k:(p + 1) * k, :M]  # (k, M) rows owned by param p
        out[name] = block.reshape(-1)[:N]
    return out


class ParameterSampler:
    """JAX/Pallas port of the ml4gw ParameterSampler.

    Each keyword argument is a (low, high) pair describing Uniform(low, high).
    __call__(N) returns {name: jnp.ndarray of shape (N,), dtype float32}.
    """

    # TODO(synk): only Uniform distributions are wired; other torch
    # distributions (Normal, PowerLaw, ...) would need in-kernel
    # Box-Muller / inverse-CDF transforms.

    def __init__(self, **parameters):
        self.names = tuple(parameters.keys())
        self.low = jnp.asarray([parameters[k][0] for k in self.names], jnp.float32)
        self.high = jnp.asarray([parameters[k][1] for k in self.names], jnp.float32)

    def __call__(self, N: int, seed: int = 0):
        return _sample_dict(N, self.names, self.low, self.high, seed)


if __name__ == "__main__":
    # Deterministic "parameter distribution" setup (synthetic, no checkpoint).
    key = jax.random.PRNGKey(0)
    k1, k2 = jax.random.split(key)
    lows = jax.random.uniform(k1, (4,), minval=0.0, maxval=10.0)
    spans = jax.random.uniform(k2, (4,), minval=1.0, maxval=50.0)
    highs = lows + spans

    sampler = ParameterSampler(
        chirp_mass=(float(lows[0]), float(highs[0])),
        mass_ratio=(float(lows[1]), float(highs[1])),
        luminosity_distance=(float(lows[2]), float(highs[2])),
        phase=(float(lows[3]), float(highs[3])),
    )

    N = 8
    out = sampler(N, seed=1234)
    jax.block_until_ready(out)

    # Sanity: correct shapes/dtypes and samples inside each parameter's support.
    for name, vals in out.items():
        assert vals.shape == (N,), (name, vals.shape)
        assert vals.dtype == jnp.float32, (name, vals.dtype)
        i = sampler.names.index(name)
        lo = float(sampler.low[i])
        hi = float(sampler.high[i])
        assert bool(jnp.all(vals >= lo)) and bool(jnp.all(vals <= hi)), name

    print("KERNEL_OK")
</pallas_src>

<mosaic_0001>
module attributes {stable_mosaic.version = 11 : i64} {
  func.func @_bits_sampler_kernel(%arg0: i32, %arg1: memref<8x128xi32, #tpu.memory_space<vmem>>, %arg2: memref<8x1xf32, #tpu.memory_space<vmem>>, %arg3: memref<8x1xf32, #tpu.memory_space<vmem>>, %arg4: memref<8x128xf32, #tpu.memory_space<vmem>>) attributes {dimension_semantics = [#tpu.dimension_semantics<arbitrary>], iteration_bounds = array<i64: 1>, scalar_prefetch = 0 : i64, scratch_operands = 0 : i64, tpu.core_type = #tpu.core_type<tc>, window_params = [{transform_indices = @transform_0, window_bounds = array<i64: 8, 128>}, {pipeline_mode = #tpu.pipeline_mode<synchronous>, transform_indices = @transform_1, window_bounds = array<i64: 8, 1>}, {pipeline_mode = #tpu.pipeline_mode<synchronous>, transform_indices = @transform_2, window_bounds = array<i64: 8, 1>}, {transform_indices = @transform_3, window_bounds = array<i64: 8, 128>}]} {
    %c0 = arith.constant 0 : index
    %c0_0 = arith.constant 0 : index
    %0 = vector.load %arg1[%c0, %c0_0] : memref<8x128xi32, #tpu.memory_space<vmem>>, vector<8x128xi32>
    %c0_1 = arith.constant 0 : index
    %c0_2 = arith.constant 0 : index
    %1 = vector.load %arg2[%c0_1, %c0_2] : memref<8x1xf32, #tpu.memory_space<vmem>>, vector<8x1xf32>
    %c0_3 = arith.constant 0 : index
    %c0_4 = arith.constant 0 : index
    %2 = vector.load %arg3[%c0_3, %c0_4] : memref<8x1xf32, #tpu.memory_space<vmem>>, vector<8x1xf32>
    %c9_i32 = arith.constant 9 : i32
    %3 = vector.broadcast %c9_i32 : i32 to vector<8x128xi32>
    %4 = arith.shrui %0, %3 : vector<8x128xi32>
    %c1065353216_i32 = arith.constant 1065353216 : i32
    %5 = vector.broadcast %c1065353216_i32 : i32 to vector<8x128xi32>
    %6 = arith.ori %4, %5 : vector<8x128xi32>
    %7 = tpu.bitcast %6 : vector<8x128xi32> -> vector<8x128xf32>
    %8 = vector.broadcast %1 : vector<8x1xf32> to vector<8x128xf32>
    %9 = arith.mulf %7, %8 : vector<8x128xf32>
    %10 = vector.broadcast %2 : vector<8x1xf32> to vector<8x128xf32>
    %11 = arith.addf %9, %10 : vector<8x128xf32>
    %c0_5 = arith.constant 0 : index
    %c0_6 = arith.constant 0 : index
    %12 = vector.load %arg4[%c0_5, %c0_6] : memref<8x128xf32, #tpu.memory_space<vmem>>, vector<8x128xf32>
    tpu.vector_store %arg4[%c0_5, %c0_6], %11 {strides = array<i32>} : memref<8x128xf32, #tpu.memory_space<vmem>>, vector<8x128xf32>,
    return
  }
  func.func @transform_0(%arg0: i32) -> (i32, i32) {
    %c0_i32 = arith.constant 0 : i32
    %c0_i32_0 = arith.constant 0 : i32
    return %c0_i32, %arg0 : i32, i32
  }
  func.func @transform_1(%arg0: i32) -> (i32, i32) {
    %c0_i32 = arith.constant 0 : i32
    %c0_i32_0 = arith.constant 0 : i32
    %c0_i32_1 = arith.constant 0 : i32
    return %c0_i32, %c0_i32_0 : i32, i32
  }
  func.func @transform_2(%arg0: i32) -> (i32, i32) {
    %c0_i32 = arith.constant 0 : i32
    %c0_i32_0 = arith.constant 0 : i32
    %c0_i32_1 = arith.constant 0 : i32
    return %c0_i32, %c0_i32_0 : i32, i32
  }
  func.func @transform_3(%arg0: i32) -> (i32, i32) {
    %c0_i32 = arith.constant 0 : i32
    %c0_i32_0 = arith.constant 0 : i32
    return %c0_i32, %arg0 : i32, i32
  }
}

</mosaic_0001>

<bundles_post_ra>
// kernel: _sample_dict.1
= control target key start
LH: loop header
LB: loop body
LE: loop exit
PB: predicated region body
PF: predicated region fallthrough
CT: control target
= control target key end

     0   :  { %v39_v0 = vmov 0   ;;  %s72_s1 = inlined_call_operand.vmem [shape: f32[8,1], index: 1, kind: input, shape index: {}]   ;;  %s73_s2 = inlined_call_operand.vmem [shape: f32[8,1], index: 2, kind: input, shape index: {}]   ;;  %s74_s0 = inlined_call_operand.vmem [shape: u32[8,128], index: 0, kind: input, shape index: {}]   ;;  %s75_s3 = inlined_call_operand.vmem [shape: f32[8,128], index: 3, kind: output, shape index: {}]  }
   0x1   :  { %38 = vset.pattern.permute.xlu0 %v39_v0  ;;  %v15_v1 = vld [vmem:[%s72_s1] sm:$0xff] }
   0x2   :  { %22 = vperm.xlu0 %38, %v15_v1   ;;  %v16_v2 = vld [vmem:[%s73_s2] sm:$0xff] }
   0x3   :  { %v14_v3 = vld [vmem:[%s74_s0] sm:$0xff] }
   0x4   :  { %v17_v4 = vshrl.u32 %v14_v3, 9 }
   0x6   :  { %28 = vperm.xlu0 %38, %v16_v2   ;;  %v18_v5 = vor.u32 1065353216, %v17_v4 }
  0x81   :  { %v23_v6 = vpop.permute.xlu0 %22 }
  0x82   :  { %v25_v7 = vmul.f32 %v23_v6, %v18_v5 }
  0x85   :  { %v29_v8 = vpop.permute.xlu0 %28 }
  0x86   :  { %v31_v9 = vadd.f32 %v29_v8, %v25_v7 }
  0x88   :  { %32 = vst [vmem:[%s75_s3] sm:$0xff] %v31_v9 }

</bundles_post_ra>
